<compile_context>
chip_gen: v5e
topology: v5e:2x2
jax: 0.10.0
libtpu: 0.0.40
codegen_flags: <defaults>
</compile_context>

<pallas_src>
import numpy as np
import jax
import jax.numpy as jnp
from jax.experimental import pallas as pl
from jax.experimental.pallas import tpu as pltpu

_MiB = 1024 * 1024
_MAX_LANE_TILE = 16384          # absolute lane-tile cap (multiple of 128)
_MIN_LANE_TILE = 512            # don't split below this on multi-TC chips
_VREG_FRIENDLY_LANES = 2048     # preferred cap when the error stream dominates
_TARGET_ERR_TILE_BYTES = 8 * _MiB   # per-step error-input tile target


def _round_up(x, m):
    return (x + m - 1) // m * m


def _round_down_to_128(x):
    return max(128, (x // 128) * 128)


def _tpu_budgets():
    """Generation-aware VMEM limit / tile budget / TensorCore count."""
    vmem_bytes = None
    try:
        vmem_bytes = int(pltpu.get_tpu_info().vmem_capacity_bytes)
    except Exception:
        vmem_bytes = None
    kind = ""
    try:
        kind = jax.devices()[0].device_kind.lower()
    except Exception:
        pass
    is_v7 = ("7x" in kind) or ("v7" in kind) or ("tpu7" in kind)
    if vmem_bytes is None:
        vmem_bytes = 64 * _MiB if is_v7 else 128 * _MiB
    num_tc = 2 if is_v7 else 1
    # Leave headroom for Mosaic internal scratch, semaphores, small buffers.
    vmem_limit = max(32 * _MiB, vmem_bytes - 12 * _MiB)
    tile_budget = max(16 * _MiB, vmem_limit - 12 * _MiB)
    return vmem_limit, tile_budget, num_tc


def _pick_lane_tile(d, n_err, tile_budget, num_tc):
    """Lane-tile width: multiple of 128, or exactly d when one tile suffices."""
    d128 = _round_up(max(d, 1), 128)
    rows = max(int(n_err), 1)
    # f32 bytes of VMEM per lane column across all streams, x2 double buffering:
    #   error in + scaled error out: 2*rows rows; center in: 1; stats out: 3.
    bytes_per_lane = 2 * (2 * rows + 4) * 4
    cap_budget = _round_down_to_128(tile_budget // bytes_per_lane)
    # Byte-based target for the per-step error tile: keeps DMAs wide when n_err
    # is tiny without collapsing the lane tile when n_err is large.
    cap_target = _round_down_to_128(_TARGET_ERR_TILE_BYTES // (4 * rows))
    tcw = min(d128, cap_budget, max(_VREG_FRIENDLY_LANES, cap_target), _MAX_LANE_TILE)
    # Multi-TensorCore chips (v7x): ensure >= one "parallel" grid step per core
    # when splitting does not shrink the tile below the floor.
    if num_tc >= 2 and tcw >= d128 and d128 >= num_tc * _MIN_LANE_TILE:
        tcw = _round_up(pl.cdiv(d128, num_tc), 128)
    if tcw >= d:
        return d  # single lane tile, exact width (legal for any d, no ragged block)
    return tcw


def _relu_col_kernel(center_ref, error_ref, nerr_ref, stats_ref):
    """Per lane-tile ReLU zonotope transform (element-wise, HBM-bandwidth bound).

    center_ref: (1, T), error_ref: (n_err, T)
    nerr_ref:   (n_err, T) scaled old error rows
    stats_ref:  (3, T)  row 0 = new_center, row 1 = mu, row 2 = crossing flag
    """
    c = center_ref[...]                                   # (1, T)
    e = error_ref[...]                                    # (n_err, T)

    apt = jnp.sum(jnp.abs(e), axis=0, keepdims=True)      # (1, T)
    ub = c + apt
    lb = c - apt

    crossing = (ub > 0.0) & (lb < 0.0)
    denom = jnp.where(crossing, ub - lb, jnp.ones_like(ub))
    slopes = jnp.where(crossing, ub / denom, jnp.zeros_like(ub))
    mu = jnp.where(crossing, slopes * lb * (-0.5), jnp.zeros_like(ub))

    # new_center: keep center where lb>=0, relaxed where crossing, else 0.
    new_center = jnp.where(
        lb >= 0.0, c, jnp.where(crossing, slopes * c + mu, jnp.zeros_like(c))
    )

    # old error rows: zero where ub<=0, scaled by slope where crossing, else kept.
    scale = jnp.where(
        ub <= 0.0, jnp.zeros_like(ub), jnp.where(crossing, slopes, jnp.ones_like(ub))
    )
    nerr_ref[...] = e * scale

    cross_f = crossing.astype(jnp.float32)
    stats_ref[...] = jnp.concatenate([new_center, mu, cross_f], axis=0)


def relu_transformer_pallas(center, error):
    """Runs the fused Pallas kernel; returns device arrays (no padding copies)."""
    center_orig_shape = tuple(center.shape)
    error_orig_shape = tuple(error.shape)
    d = int(np.prod(center_orig_shape))
    n_err = int(error_orig_shape[0])

    c2 = jnp.asarray(center, jnp.float32).reshape(1, d)
    e2 = jnp.asarray(error, jnp.float32).reshape(n_err, d)

    vmem_limit, tile_budget, num_tc = _tpu_budgets()
    tcw = _pick_lane_tile(d, n_err, tile_budget, num_tc)
    nd = int(pl.cdiv(d, tcw))

    new_err_old, stats = pl.pallas_call(
        _relu_col_kernel,
        out_shape=(
            jax.ShapeDtypeStruct((n_err, d), jnp.float32),
            jax.ShapeDtypeStruct((3, d), jnp.float32),
        ),
        grid_spec=pltpu.PrefetchScalarGridSpec(
            num_scalar_prefetch=0,
            grid=(nd,),
            in_specs=[
                pl.BlockSpec((1, tcw), lambda j: (0, j)),
                pl.BlockSpec((n_err, tcw), lambda j: (0, j)),
            ],
            out_specs=[
                pl.BlockSpec((n_err, tcw), lambda j: (0, j)),
                pl.BlockSpec((3, tcw), lambda j: (0, j)),
            ],
        ),
        compiler_params=pltpu.CompilerParams(
            dimension_semantics=("parallel",),
            vmem_limit_bytes=vmem_limit,
        ),
    )(c2, e2)

    return new_err_old, stats, d, n_err, center_orig_shape, error_orig_shape


def relu_transformer_forward(center, error):
    """Full forward matching the PyTorch module (dynamic output row count)."""
    new_err_old, stats, d, n_err, c_shape, e_shape = relu_transformer_pallas(
        center, error
    )

    new_center = stats[0]
    mu = stats[1]
    crossing = stats[2]

    # Only the O(d) crossing row comes to host (to size the dynamic output);
    # the O(n_err*d) scaled-error array stays on device.
    cross_np = np.asarray(jax.device_get(crossing)) > 0.5
    cols = np.nonzero(cross_np)[0]           # ascending, matching torch.where order
    n_new = int(cols.shape[0])

    if n_new > 0:
        cols_dev = jnp.asarray(cols, jnp.int32)
        new_rows = (
            jnp.zeros((n_new, d), jnp.float32)
            .at[jnp.arange(n_new), cols_dev]
            .set(mu[cols_dev])
        )
        new_error = jnp.concatenate([new_err_old, new_rows], axis=0)
    else:
        new_error = new_err_old

    new_center = new_center.reshape(c_shape)
    new_error = new_error.reshape((n_err + n_new,) + tuple(e_shape[1:]))
    return new_center, new_error


def relu_transformer_ref(center, error):
    """Pure NumPy transcription of the PyTorch forward (ground truth)."""
    c_shape = center.shape
    e_shape = error.shape
    c = np.asarray(center, np.float32).reshape(-1)
    e = np.asarray(error, np.float32).reshape(e_shape[0], -1)
    apt = np.sum(np.abs(e), axis=0, keepdims=True)
    ub = c + apt
    lb = c - apt
    case_idx = np.where((ub > 0) & (lb < 0))
    n_error, d = e.shape
    n_new = case_idx[0].shape[0]
    new_error = np.zeros((n_error + n_new, d), dtype=np.float32)
    new_error[:n_error] = e
    new_error[:, ub[0] <= 0] = 0
    new_center = np.zeros(c.shape, dtype=np.float32)
    new_center[lb[0] >= 0] = c[lb[0] >= 0]
    ub_s = ub[case_idx]
    lb_s = lb[case_idx]
    e_s = e[:, case_idx[1]]
    c_s = c[case_idx[1]]
    slopes = ub_s / (ub_s - lb_s)
    mu = -slopes * lb_s / 2
    new_center[case_idx[1]] = slopes * c_s + mu
    new_error[:n_error, case_idx[1]] = e_s * slopes[None]
    for ei in range(n_new):
        new_error[n_error + ei, case_idx[1][ei]] = mu[ei]
    new_center = new_center.reshape(c_shape)
    new_error = new_error.reshape((new_error.shape[0],) + tuple(e_shape[1:]))
    return new_center, new_error


if __name__ == "__main__":
    key = jax.random.PRNGKey(0)
    k1, k2 = jax.random.split(key)

    # center: (C, H, W) = (4, 16, 16) -> d = 1024; error: (n_error, C, H, W)
    center = jax.random.normal(k1, (4, 16, 16), dtype=jnp.float32)
    error = 0.3 * jax.random.normal(k2, (8, 4, 16, 16), dtype=jnp.float32)

    nc_out, ne_out = relu_transformer_forward(center, error)
    jax.block_until_ready((nc_out, ne_out))

    nc_ref, ne_ref = relu_transformer_ref(np.asarray(center), np.asarray(error))
    nc_np = np.asarray(nc_out)
    ne_np = np.asarray(ne_out)

    assert nc_np.shape == nc_ref.shape, (nc_np.shape, nc_ref.shape)
    assert ne_np.shape == ne_ref.shape, (ne_np.shape, ne_ref.shape)
    np.testing.assert_allclose(nc_np, nc_ref, rtol=1e-5, atol=1e-5)
    np.testing.assert_allclose(ne_np, ne_ref, rtol=1e-5, atol=1e-5)

    print("KERNEL_OK")
</pallas_src>

<mosaic_0001>
module attributes {stable_mosaic.version = 11 : i64} {
  func.func @_relu_col_kernel(%arg0: i32, %arg1: memref<1x1024xf32, #tpu.memory_space<vmem>>, %arg2: memref<8x1024xf32, #tpu.memory_space<vmem>>, %arg3: memref<8x1024xf32, #tpu.memory_space<vmem>>, %arg4: memref<3x1024xf32, #tpu.memory_space<vmem>>) attributes {dimension_semantics = [#tpu.dimension_semantics<parallel>], iteration_bounds = array<i64: 1>, scalar_prefetch = 0 : i64, scratch_operands = 0 : i64, tpu.core_type = #tpu.core_type<tc>, window_params = [{transform_indices = @transform_0, window_bounds = array<i64: 1, 1024>}, {transform_indices = @transform_1, window_bounds = array<i64: 8, 1024>}, {transform_indices = @transform_2, window_bounds = array<i64: 8, 1024>}, {transform_indices = @transform_3, window_bounds = array<i64: 3, 1024>}]} {
    %c0 = arith.constant 0 : index
    %c0_0 = arith.constant 0 : index
    %0 = vector.load %arg1[%c0, %c0_0] : memref<1x1024xf32, #tpu.memory_space<vmem>>, vector<1x1024xf32>
    %c0_1 = arith.constant 0 : index
    %c0_2 = arith.constant 0 : index
    %1 = vector.load %arg2[%c0_1, %c0_2] : memref<8x1024xf32, #tpu.memory_space<vmem>>, vector<8x1024xf32>
    %2 = math.absf %1 : vector<8x1024xf32>
    %cst = arith.constant dense<0.000000e+00> : vector<1024xf32>
    %3 = vector.multi_reduction <add>, %2, %cst [0] : vector<8x1024xf32> to vector<1024xf32>
    %4 = vector.shape_cast %3 : vector<1024xf32> to vector<1x1024xf32>
    %5 = arith.addf %0, %4 : vector<1x1024xf32>
    %6 = arith.subf %0, %4 : vector<1x1024xf32>
    %cst_3 = arith.constant 0.000000e+00 : f32
    %7 = vector.broadcast %cst_3 : f32 to vector<1x1024xf32>
    %8 = arith.cmpf ogt, %5, %7 : vector<1x1024xf32>
    %cst_4 = arith.constant 0.000000e+00 : f32
    %9 = vector.broadcast %cst_4 : f32 to vector<1x1024xf32>
    %10 = arith.cmpf olt, %6, %9 : vector<1x1024xf32>
    %11 = arith.andi %8, %10 : vector<1x1024xi1>
    %12 = arith.subf %5, %6 : vector<1x1024xf32>
    %cst_5 = arith.constant 1.000000e+00 : f32
    %13 = vector.broadcast %cst_5 : f32 to vector<1x1024xf32>
    %14 = arith.select %11, %12, %13 : vector<1x1024xi1>, vector<1x1024xf32>
    %15 = arith.divf %5, %14 : vector<1x1024xf32>
    %cst_6 = arith.constant 0.000000e+00 : f32
    %16 = vector.broadcast %cst_6 : f32 to vector<1x1024xf32>
    %17 = arith.select %11, %15, %16 : vector<1x1024xi1>, vector<1x1024xf32>
    %18 = arith.mulf %17, %6 : vector<1x1024xf32>
    %cst_7 = arith.constant -5.000000e-01 : f32
    %19 = vector.broadcast %cst_7 : f32 to vector<1x1024xf32>
    %20 = arith.mulf %18, %19 : vector<1x1024xf32>
    %cst_8 = arith.constant 0.000000e+00 : f32
    %21 = vector.broadcast %cst_8 : f32 to vector<1x1024xf32>
    %22 = arith.select %11, %20, %21 : vector<1x1024xi1>, vector<1x1024xf32>
    %cst_9 = arith.constant 0.000000e+00 : f32
    %23 = vector.broadcast %cst_9 : f32 to vector<1x1024xf32>
    %24 = arith.cmpf oge, %6, %23 : vector<1x1024xf32>
    %25 = arith.mulf %17, %0 : vector<1x1024xf32>
    %26 = arith.addf %25, %22 : vector<1x1024xf32>
    %cst_10 = arith.constant 0.000000e+00 : f32
    %27 = vector.broadcast %cst_10 : f32 to vector<1x1024xf32>
    %28 = arith.select %11, %26, %27 : vector<1x1024xi1>, vector<1x1024xf32>
    %29 = arith.select %24, %0, %28 : vector<1x1024xi1>, vector<1x1024xf32>
    %cst_11 = arith.constant 0.000000e+00 : f32
    %30 = vector.broadcast %cst_11 : f32 to vector<1x1024xf32>
    %31 = arith.cmpf ole, %5, %30 : vector<1x1024xf32>
    %cst_12 = arith.constant 0.000000e+00 : f32
    %32 = vector.broadcast %cst_12 : f32 to vector<1x1024xf32>
    %cst_13 = arith.constant 1.000000e+00 : f32
    %33 = vector.broadcast %cst_13 : f32 to vector<1x1024xf32>
    %34 = arith.select %11, %17, %33 : vector<1x1024xi1>, vector<1x1024xf32>
    %35 = arith.select %31, %32, %34 : vector<1x1024xi1>, vector<1x1024xf32>
    %36 = vector.broadcast %35 : vector<1x1024xf32> to vector<8x1024xf32>
    %37 = arith.mulf %1, %36 : vector<8x1024xf32>
    %c0_14 = arith.constant 0 : index
    %c0_15 = arith.constant 0 : index
    %38 = vector.load %arg3[%c0_14, %c0_15] : memref<8x1024xf32, #tpu.memory_space<vmem>>, vector<8x1024xf32>
    tpu.vector_store %arg3[%c0_14, %c0_15], %37 {strides = array<i32>} : memref<8x1024xf32, #tpu.memory_space<vmem>>, vector<8x1024xf32>,
    %39 = arith.extui %11 : vector<1x1024xi1> to vector<1x1024xi32>
    %40 = arith.sitofp %39 : vector<1x1024xi32> to vector<1x1024xf32>
    %41 = tpu.concatenate %29, %22, %40 in 0 : vector<1x1024xf32>, vector<1x1024xf32>, vector<1x1024xf32> -> vector<3x1024xf32>
    %c0_16 = arith.constant 0 : index
    %c0_17 = arith.constant 0 : index
    %42 = vector.load %arg4[%c0_16, %c0_17] : memref<3x1024xf32, #tpu.memory_space<vmem>>, vector<3x1024xf32>
    tpu.vector_store %arg4[%c0_16, %c0_17], %41 {strides = array<i32>} : memref<3x1024xf32, #tpu.memory_space<vmem>>, vector<3x1024xf32>,
    return
  }
  func.func @transform_0(%arg0: i32) -> (i32, i32) {
    %c0_i32 = arith.constant 0 : i32
    %c0_i32_0 = arith.constant 0 : i32
    return %c0_i32, %arg0 : i32, i32
  }
  func.func @transform_1(%arg0: i32) -> (i32, i32) {
    %c0_i32 = arith.constant 0 : i32
    %c0_i32_0 = arith.constant 0 : i32
    return %c0_i32, %arg0 : i32, i32
  }
  func.func @transform_2(%arg0: i32) -> (i32, i32) {
    %c0_i32 = arith.constant 0 : i32
    %c0_i32_0 = arith.constant 0 : i32
    return %c0_i32, %arg0 : i32, i32
  }
  func.func @transform_3(%arg0: i32) -> (i32, i32) {
    %c0_i32 = arith.constant 0 : i32
    %c0_i32_0 = arith.constant 0 : i32
    return %c0_i32, %arg0 : i32, i32
  }
}

</mosaic_0001>

<bundles_post_ra>
// kernel: tpu_custom_call.1
= control target key start
LH: loop header
LB: loop body
LE: loop exit
PB: predicated region body
PF: predicated region fallthrough
CT: control target
= control target key end

     0   :  { %9 = vsyncpa [#allocation3], 0  ;;  %s596_s0 = inlined_call_operand.hbm [shape: f32[1,1024], index: 0, kind: input, shape index: {}]   ;;  %s597_s1 = inlined_call_operand.hbm [shape: f32[8,1024], index: 1, kind: input, shape index: {}]   ;;  %s598_s2 = inlined_call_operand.hbm [shape: f32[8,1024], index: 2, kind: output, shape index: {0}]   ;;  %s599_s3 = inlined_call_operand.hbm [shape: f32[3,1024], index: 3, kind: output, shape index: {1}]  }
   0x1   :  { %10 = vsyncpa [#allocation6], 0 }
   0x2   :  { %11 = vsyncpa [#allocation4], 0 }
   0x3   :  { %12 = vsyncpa [#allocation9], 0  ;;  %s18_s14 = sshll.u32 %s596_s0, 4  ;;  %s444_s15 = smov [#allocation2]   ;;  %s19_s14 = int_to_ptr.hbm [resolvable:$true] %s18_s14 }
   0x4   :  { %s20_s16 = sshll.u32 %s444_s15, 4  ;;  %s29_s19 = sshll.u32 %s597_s1, 4  ;;  %s21_s16 = int_to_ptr.vmem [resolvable:$true] %s20_s16  ;;  %s30_s19 = int_to_ptr.hbm [resolvable:$true] %s29_s19 }
   0x5   :  { %23 = dma.hbm_to_vmem [thread:$0]  %s19_s14, 128, %s21_s16, [#allocation3]  }
   0x6   :  { %s445_s20 = smov [#allocation5]  }
   0x7   :  { %s31_s21 = sshll.u32 %s445_s20, 4  ;;  %s32_s21 = int_to_ptr.vmem [resolvable:$true] %s31_s21 }
   0x8   :  { %34 = dma.hbm_to_vmem [thread:$0]  %s30_s19, 1024, %s32_s21, [#allocation6]  }
   0x9   :  { %436 = dma.done.wait [#allocation3], 128  }
   0xa   :  { %437 = vsyncadd [#allocation3], 4294967168 }
   0xb   :  { %438 = dma.done.wait [#allocation6], 1024  }
   0xc   :  { %439 = vsyncadd [#allocation6], 4294966272  ;;  %v475_v0 = vld [vmem:[#allocation5] sm:$0xff]  ;;  %v477_v1 = vld [vmem:[#allocation5 + $0x8] sm:$0xff]  ;;  %vm123_vm0 = vcmask 1040384   ;;  %vm125_vm1 = vcmask 1042434  }
   0xd   :  { %v479_v2 = vld [vmem:[#allocation5 + $0x10] sm:$0xff]  ;;  %v481_v3 = vld [vmem:[#allocation5 + $0x18] sm:$0xff]  ;;  %v483_v4 = vld [vmem:[#allocation5 + $0x20] sm:$0xff]  ;;  %v52_v5 = vand.u32 2147483647, %v475_v0  ;;  %vm127_vm2 = vcmask 1041408  }
   0xe   :  { %v486_v6 = vld [vmem:[#allocation5 + $0x28] sm:$0xff]  ;;  %v488_v7 = vld [vmem:[#allocation5 + $0x30] sm:$0xff]  ;;  %v490_v8 = vld [vmem:[#allocation5 + $0x38] sm:$0xff]  ;;  %v53_v9 = vand.u32 2147483647, %v477_v1  ;;  %vm129_vm3 = vcmask 1044484  }
   0xf   :  { %v54_v10 = vand.u32 2147483647, %v479_v2  ;;  %v55_v11 = vand.u32 2147483647, %v481_v3  ;;  %v56_v12 = vand.u32 2147483647, %v483_v4 }
  0x10   :  { %v57_v13 = vand.u32 2147483647, %v486_v6  ;;  %v58_v14 = vand.u32 2147483647, %v488_v7  ;;  %v59_v15 = vand.u32 2147483647, %v490_v8 }
  0x11   :  { %v60_v16 = vrot.slane %v52_v5, 4  ;;  %v66_v17 = vrot.slane %v53_v9, 4  ;;  %v72_v18 = vrot.slane %v54_v10, 4  ;;  %v78_v19 = vrot.slane %v55_v11, 4  ;;  %s305_s22 = sshll.u32 %s598_s2, 4  ;;  %s447_s23 = smov [#allocation7]   ;;  %s306_s22 = int_to_ptr.hbm [resolvable:$true] %s305_s22 }
  0x12   :  { %v84_v20 = vrot.slane %v56_v12, 4  ;;  %v90_v21 = vrot.slane %v57_v13, 4  ;;  %v96_v22 = vrot.slane %v58_v14, 4  ;;  %v102_v23 = vrot.slane %v59_v15, 4  ;;  %s552_s24 = sshll.u32 %s447_s23, 4  ;;  %s448_s2 = smov [#allocation8]   ;;  %s304_s24 = int_to_ptr.vmem [resolvable:$true] %s552_s24 }
  0x13   :  { %v61_v24 = vadd.f32 %v60_v16, %v52_v5  ;;  %v67_v25 = vadd.f32 %v66_v17, %v53_v9  ;;  %v73_v26 = vadd.f32 %v72_v18, %v54_v10  ;;  %v79_v27 = vadd.f32 %v78_v19, %v55_v11  ;;  %v501_v17 = vld [vmem:[#allocation2] sm:$0xff]  ;;  %s314_s25 = sshll.u32 %s448_s2, 4  ;;  %s316_s28 = sshll.u32 %s599_s3, 4  ;;  %s315_s25 = int_to_ptr.vmem [resolvable:$true] %s314_s25  ;;  %s317_s28 = int_to_ptr.hbm [resolvable:$true] %s316_s28 }
  0x14   :  { %v85_v28 = vadd.f32 %v84_v20, %v56_v12  ;;  %v91_v29 = vadd.f32 %v90_v21, %v57_v13  ;;  %v97_v30 = vadd.f32 %v96_v22, %v58_v14  ;;  %v103_v31 = vadd.f32 %v102_v23, %v59_v15 }
  0x15   :  { %v62_v32 = vrot.slane %v61_v24, 2  ;;  %v68_v33 = vrot.slane %v67_v25, 2  ;;  %v74_v34 = vrot.slane %v73_v26, 2  ;;  %v80_v35 = vrot.slane %v79_v27, 2 }
  0x16   :  { %vm131_vm4 = vcmask 1046534   ;;  %v86_v36 = vrot.slane %v85_v28, 2  ;;  %v92_v37 = vrot.slane %v91_v29, 2  ;;  %v98_v38 = vrot.slane %v97_v30, 2 }
  0x17   :  { %v104_v39 = vrot.slane %v103_v31, 2  ;;  %v63_v40 = vadd.f32 %v62_v32, %v61_v24  ;;  %v69_v41 = vadd.f32 %v68_v33, %v67_v25  ;;  %v75_v42 = vadd.f32 %v74_v34, %v73_v26 }
  0x18   :  { %v81_v43 = vadd.f32 %v80_v35, %v79_v27  ;;  %v87_v44 = vadd.f32 %v86_v36, %v85_v28  ;;  %v93_v45 = vadd.f32 %v92_v37, %v91_v29  ;;  %v99_v46 = vadd.f32 %v98_v38, %v97_v30 }
  0x19   :  { %v105_v47 = vadd.f32 %v104_v39, %v103_v31  ;;  %v64_v48 = vrot.slane %v63_v40, 1  ;;  %v70_v49 = vrot.slane %v69_v41, 1  ;;  %v76_v50 = vrot.slane %v75_v42, 1 }
  0x1a   :  { %v82_v51 = vrot.slane %v81_v43, 1  ;;  %v88_v52 = vrot.slane %v87_v44, 1  ;;  %v94_v53 = vrot.slane %v93_v45, 1  ;;  %v100_v54 = vrot.slane %v99_v46, 1 }
  0x1b   :  { %v106_v55 = vrot.slane %v105_v47, 1  ;;  %v65_v56 = vadd.f32 %v64_v48, %v63_v40  ;;  %v71_v57 = vadd.f32 %v70_v49, %v69_v41  ;;  %v77_v58 = vadd.f32 %v76_v50, %v75_v42 }
  0x1c   :  { %v83_v59 = vadd.f32 %v82_v51, %v81_v43  ;;  %v89_v60 = vadd.f32 %v88_v52, %v87_v44  ;;  %v95_v61 = vadd.f32 %v94_v53, %v93_v45  ;;  %v101_v62 = vadd.f32 %v100_v54, %v99_v46 }
  0x1d   :  { %v107_v63 = vadd.f32 %v106_v55, %v105_v47  ;;  %v116_v5 = vrot.slane %v71_v57, 7  ;;  %v117_v9 = vrot.slane %v77_v58, 6  ;;  %vm133_vm5 = vcmask 1045508  }
  0x1e   :  { %v118_v10 = vrot.slane %v83_v59, 5  ;;  %v119_v11 = vrot.slane %v89_v60, 4  ;;  %v120_v12 = vrot.slane %v95_v61, 3  ;;  %v121_v13 = vrot.slane %v101_v62, 2 }
  0x1f   :  { %v122_v14 = vrot.slane %v107_v63, 1  ;;  %v124_v15 = vsel %vm123_vm0, %v65_v56, %v116_v5  ;;  %vm135_vm6 = vcmask 1043456   ;;  %v446_v37 = vmov 0.0  }
  0x20   :  { %v126_v16 = vsel %vm125_vm1, %v117_v9, %v118_v10  ;;  %v130_v19 = vsel %vm129_vm3, %v119_v11, %v120_v12 }
  0x21   :  { %v128_v18 = vsel %vm127_vm2, %v124_v15, %v126_v16  ;;  %v132_v20 = vsel %vm131_vm4, %v121_v13, %v122_v14 }
  0x22   :  { %v134_v21 = vsel %vm133_vm5, %v130_v19, %v132_v20 }
  0x23   :  { %v136_v22 = vsel %vm135_vm6, %v128_v18, %v134_v21 }
  0x24   :  { %v138_v23 = vadd.f32 %v136_v22, %v501_v17  ;;  %v509_v24 = vsub.f32 %v501_v17, %v136_v22 }
  0x26   :  { %vm140_vm7 = vcmp.gt.f32.partialorder %v138_v23, 0.0  ;;  %vm141_vm8 = vcmp.lt.f32.partialorder %v509_v24, 0.0  ;;  %v143_v25 = vsub.f32 %v138_v23, %v509_v24  ;;  %vm169_vm14 = vcmp.le.f32.partialorder %v138_v23, 0.0 }
  0x27   :  { %vm513_vm9 = vmand %vm140_vm7, %vm141_vm8  ;;  %vm164_vm15 = vcmp.ge.f32.partialorder %v509_v24, 0.0 }
  0x28   :  { %v144_v27 = vsel %vm513_vm9, %v143_v25, 1.0  ;;  %v521_v38 = vsel %vm513_vm9, 1.0, %v446_v37 }
  0x29   :  { %338 = vrcp.f32 %v144_v27  ;;  %v156_v30 = vand.u32 2147483648, %v144_v27  ;;  %vm150_vm10 = vweird.f32 %v144_v27  ;;  %v154_v32 = vand.u32 2147483647, %v144_v27 }
  0x2a   :  { %v242_v41 = vperm.slane %v521_v38, 0  ;;  %v243_v42 = vperm.slane %v521_v38, 1  ;;  %v244_v45 = vperm.slane %v521_v38, 2  ;;  %v245_v46 = vperm.slane %v521_v38, 3 }
  0x2b   :  { %v157_v34 = vor.u32 1.1754944e-38, %v156_v30  ;;  %vm155_vm13 = vcmp.eq.f32.partialorder %v154_v32, 8.507059e+37  ;;  %v246_v50 = vperm.slane %v521_v38, 4  ;;  %v247_v62 = vperm.slane %v521_v38, 5 }
  0x2c   :  { %v248_v9 = vperm.slane %v521_v38, 6  ;;  %v249_v10 = vperm.slane %v521_v38, 7 }
  0x2f   :  { %v339_v28 = vpop.eup %338 }
  0x30   :  { %v146_v29 = vmul.f32 %v339_v28, %v144_v27  ;;  %vm151_vm11 = vweird.f32 %v339_v28 }
  0x31   :  { %vm152_vm12 = vmor %vm150_vm10, %vm151_vm11 }
  0x32   :  { %v147_v31 = vsub.f32 1.0, %v146_v29 }
  0x34   :  { %v148_v33 = vmul.f32 %v339_v28, %v147_v31 }
  0x36   :  { %v149_v35 = vadd.f32 %v339_v28, %v148_v33 }
  0x38   :  { %v153_v36 = vsel %vm152_vm12, %v339_v28, %v149_v35 }
  0x39   :  { %v158_v39 = vsel %vm155_vm13, %v157_v34, %v153_v36 }
  0x3a   :  { %v159_v40 = vmul.f32 %v158_v39, %v138_v23 }
  0x3c   :  { %v160_v43 = vsel %vm513_vm9, %v159_v40, 0.0  ;;  %v170_v44 = vsel %vm513_vm9, %v159_v40, 1.0 }
  0x3d   :  { %v161_v47 = vmul.f32 %v160_v43, %v509_v24  ;;  %v165_v48 = vmul.f32 %v160_v43, %v501_v17  ;;  %v171_v49 = vsel %vm169_vm14, 0.0, %v170_v44 }
  0x3e   :  { %v173_v51 = vperm.slane %v171_v49, 0  ;;  %v174_v52 = vperm.slane %v171_v49, 1  ;;  %v175_v53 = vperm.slane %v171_v49, 2  ;;  %v176_v54 = vperm.slane %v171_v49, 3 }
  0x3f   :  { %v162_v55 = vmul.f32 -0.5, %v161_v47  ;;  %v177_v56 = vperm.slane %v171_v49, 4  ;;  %v178_v57 = vperm.slane %v171_v49, 5  ;;  %v179_v58 = vperm.slane %v171_v49, 6 }
  0x40   :  { %v189_v59 = vmul.f32 %v173_v51, %v475_v0  ;;  %v190_v60 = vmul.f32 %v174_v52, %v477_v1  ;;  %v191_v61 = vmul.f32 %v175_v53, %v479_v2  ;;  %v192_v5 = vmul.f32 %v176_v54, %v481_v3 }
  0x41   :  { %v163_v63 = vsel %vm513_vm9, %v162_v55, 0.0  ;;  %v193_v12 = vmul.f32 %v177_v56, %v483_v4  ;;  %v194_v0 = vmul.f32 %v178_v57, %v486_v6  ;;  %v180_v1 = vperm.slane %v171_v49, 7 }
  0x42   :  { %v166_v11 = vadd.f32 %v165_v48, %v163_v63  ;;  %197 = vst [vmem:[#allocation7] sm:$0xff] %v189_v59  ;;  %v195_v2 = vmul.f32 %v179_v58, %v488_v7  ;;  %v225_v13 = vperm.slane %v163_v63, 0  ;;  %v226_v14 = vperm.slane %v163_v63, 1 }
  0x43   :  { %198 = vst [vmem:[#allocation7 + $0x8] sm:$0xff] %v190_v60  ;;  %v227_v15 = vperm.slane %v163_v63, 2  ;;  %v228_v16 = vperm.slane %v163_v63, 3  ;;  %v229_v18 = vperm.slane %v163_v63, 4  ;;  %v230_v4 = vperm.slane %v163_v63, 5 }
  0x44   :  { %199 = vst [vmem:[#allocation7 + $0x10] sm:$0xff] %v191_v61  ;;  %v167_v3 = vsel %vm513_vm9, %v166_v11, 0.0  ;;  %v196_v6 = vmul.f32 %v180_v1, %v490_v8  ;;  %v231_v19 = vperm.slane %v163_v63, 6  ;;  %v232_v20 = vperm.slane %v163_v63, 7 }
  0x45   :  { %200 = vst [vmem:[#allocation7 + $0x18] sm:$0xff] %v192_v5  ;;  %v168_v7 = vsel %vm164_vm15, %v501_v17, %v167_v3 }
  0x46   :  { %201 = vst [vmem:[#allocation7 + $0x20] sm:$0xff] %v193_v12  ;;  %v208_v21 = vperm.slane %v168_v7, 0  ;;  %v209_v22 = vperm.slane %v168_v7, 1  ;;  %v210_v23 = vperm.slane %v168_v7, 2  ;;  %v211_v25 = vperm.slane %v168_v7, 3 }
  0x47   :  { %202 = vst [vmem:[#allocation7 + $0x28] sm:$0xff] %v194_v0  ;;  %v212_v26 = vperm.slane %v168_v7, 4  ;;  %v213_v27 = vperm.slane %v168_v7, 5  ;;  %v214_v28 = vperm.slane %v168_v7, 6  ;;  %v215_v29 = vperm.slane %v168_v7, 7 }
  0x48   :  { %203 = vst [vmem:[#allocation7 + $0x30] sm:$0xff] %v195_v2  ;;  %v258_v8 = vsel %vm123_vm0, %v208_v21, %v225_v13  ;;  %v259_v24 = vsel %vm123_vm0, %v209_v22, %v226_v14  ;;  %v260_v17 = vsel %vm123_vm0, %v210_v23, %v227_v15  ;;  %v261_v30 = vsel %vm123_vm0, %v211_v25, %v228_v16 }
  0x49   :  { %204 = vst [vmem:[#allocation7 + $0x38] sm:$0xff] %v196_v6  ;;  %v266_v31 = vsel %vm127_vm2, %v258_v8, %v242_v41  ;;  %v267_v32 = vsel %vm127_vm2, %v259_v24, %v243_v42  ;;  %v268_v33 = vsel %vm127_vm2, %v260_v17, %v244_v45  ;;  %v269_v34 = vsel %vm127_vm2, %v261_v30, %v245_v46 }
  0x4a   :  { %v282_v35 = vrot.slane %v267_v32, 4  ;;  %v283_v36 = vrot.slane %v269_v34, 4  ;;  %v262_v37 = vsel %vm123_vm0, %v212_v26, %v229_v18  ;;  %v263_v39 = vsel %vm123_vm0, %v213_v27, %v230_v4  ;;  %308 = dma.vmem_to_hbm [thread:$0]  %s304_s24, 1024, %s306_s22, [#allocation4]  }
  0x4b   :  { %v270_v40 = vsel %vm127_vm2, %v262_v37, %v246_v50  ;;  %v271_v41 = vsel %vm127_vm2, %v263_v39, %v247_v62  ;;  %v264_v42 = vsel %vm123_vm0, %v214_v28, %v231_v19  ;;  %v265_v43 = vsel %vm123_vm0, %v215_v29, %v232_v20 }
  0x4c   :  { %v286_v44 = vsel %vm135_vm6, %v266_v31, %v282_v35  ;;  %v287_v45 = vsel %vm135_vm6, %v268_v33, %v283_v36  ;;  %v284_v46 = vrot.slane %v271_v41, 4  ;;  %v272_v47 = vsel %vm127_vm2, %v264_v42, %v248_v9 }
  0x4d   :  { %294 = vst [vmem:[#allocation8] sm:$0x77] %v286_v44  ;;  %v273_v48 = vsel %vm127_vm2, %v265_v43, %v249_v10 }
  0x4e   :  { %295 = vst [vmem:[#allocation8 + $0x8] sm:$0x77] %v287_v45  ;;  %v288_v49 = vsel %vm135_vm6, %v270_v40, %v284_v46  ;;  %v285_v50 = vrot.slane %v273_v48, 4 }
  0x4f   :  { %296 = vst [vmem:[#allocation8 + $0x10] sm:$0x77] %v288_v49 }
  0x50   :  { %v289_v51 = vsel %vm135_vm6, %v272_v47, %v285_v50 }
  0x51   :  { %297 = vst [vmem:[#allocation8 + $0x18] sm:$0x77] %v289_v51 }
  0x52   :  { %319 = dma.vmem_to_hbm [thread:$0]  %s315_s25, 512, %s317_s28, [#allocation9]  }
  0x53   :  { %440 = dma.done.wait [#allocation4], 1024  }
  0x54   :  { %441 = vsyncadd [#allocation4], 4294966272 }
  0x55   :  { %442 = dma.done.wait [#allocation9], 512  }
  0x56   :  { %443 = vsyncadd [#allocation9], 4294966784 }
  0x57   :  { %328 = vsyncpa [#allocation3], 1 }
  0x58   :  { %329 = vsyncpa [#allocation6], 1 }
  0x59   :  { %330 = vsyncpa [#allocation4], 1 }
  0x5a   :  { %331 = vsyncpa [#allocation9], 1 }

</bundles_post_ra>
